<compile_context>
chip_gen: v6e
topology: v6e:2x2x1
jax: 0.10.0
libtpu: 0.0.40
codegen_flags: <defaults>
</compile_context>

<pallas_src>
import functools

import jax
import jax.numpy as jnp
from jax.experimental import pallas as pl
from jax.experimental.pallas import tpu as pltpu


# --------------------------------------------------------------------------
# Kernel
# --------------------------------------------------------------------------
def _noiser_kernel(z_ref, w1_ref, w2_ref, out_ref, *, input_dim):
    I = input_dim
    tb = out_ref.shape[0]

    # Fused 3-head MLP, biases folded in:
    #   z_aug (tb, I+1)  @ W1_aug (I+1, 3H+1) -> h (tb, 3H+1), last col == 1
    #   ReLU(h)          @ W2_aug (3H+1, 3I)  -> o (tb, 3I)
    h = jnp.dot(z_ref[...], w1_ref[...],
                precision=jax.lax.Precision.HIGHEST,
                preferred_element_type=jnp.float32)
    h = jnp.maximum(h, 0.0)
    o = jnp.dot(h, w2_ref[...],
                precision=jax.lax.Precision.HIGHEST,
                preferred_element_type=jnp.float32)
    o = jax.nn.sigmoid(o)

    # Row-max normalization constants for the size / delay segments.
    # (sigmoid > 0 => max > 0, no div-by-zero.)
    size_scale = 1460.0 / jnp.max(o[:, I:2 * I], axis=1, keepdims=True)
    delay_scale = 256.0 / jnp.max(o[:, 2 * I:3 * I], axis=1, keepdims=True)

    # Per-lane segment scale (where -> 1, size -> 1460/max, delay -> 256/max);
    # avoids slicing o into pieces and re-concatenating.
    lane = jax.lax.broadcasted_iota(jnp.int32, o.shape, 1)
    scale = jnp.where(lane < I, 1.0,
                      jnp.where(lane < 2 * I, size_scale, delay_scale))

    # Direct sub-stores into the lane-dense 128-wide output slab.
    out_ref[:, :3 * I] = o * scale
    out_ref[:, 3 * I:] = jnp.zeros((tb, out_ref.shape[1] - 3 * I), jnp.float32)


# --------------------------------------------------------------------------
# Host-side packing (done ONCE at module construction)
# --------------------------------------------------------------------------
def pack_params(params):
    """Fuse the 3 heads into two matrices with biases folded in.

    W1_aug : (I+1, 3H+1)  rows 0..I-1 = [W1_where | W1_size | W1_delay],
             row I = [b1_where | b1_size | b1_delay | 1]; last column zero
             elsewhere (constant-one hidden unit).
    W2_aug : (3H+1, 3I)   rows 0..3H-1 = block_diag(W2_*), row 3H = [b2_*].
    """
    I, H = params["where_w1"].shape
    w1 = jnp.concatenate(
        [params["where_w1"], params["size_w1"], params["delay_w1"]], axis=1)
    b1 = jnp.concatenate(
        [params["where_b1"], params["size_b1"], params["delay_b1"]], axis=1)
    w1_aug = jnp.zeros((I + 1, 3 * H + 1), jnp.float32)
    w1_aug = w1_aug.at[:I, :3 * H].set(w1)
    w1_aug = w1_aug.at[I, :3 * H].set(b1[0])
    w1_aug = w1_aug.at[I, 3 * H].set(1.0)          # constant-one hidden unit

    w2_bd = jax.scipy.linalg.block_diag(
        params["where_w2"], params["size_w2"], params["delay_w2"])
    b2 = jnp.concatenate(
        [params["where_b2"], params["size_b2"], params["delay_b2"]], axis=1)
    w2_aug = jnp.concatenate([w2_bd, b2], axis=0)
    return w1_aug, w2_aug


def _batch_tiling(batch):
    """Batch tile size + number of grid blocks."""
    if batch <= 512:
        return batch, 1                              # single block, whole batch
    # Large batches: big tiles (per-step overhead ~0.35us) but keep >= 2 blocks
    # so the 'parallel' grid axis feeds both TensorCores on v7x.
    tb = min(1024, ((pl.cdiv(batch, 2) + 7) // 8) * 8)
    return tb, pl.cdiv(batch, tb)


def _noiser_pallas(z_aug, w1_aug, w2_aug, *, input_dim):
    batch, zin = z_aug.shape
    k1, n1 = w1_aug.shape                            # (I+1, 3H+1)
    _, out3 = w2_aug.shape                           # 3*I
    out_w = ((out3 + 127) // 128) * 128              # lane-dense output slab
    tb, n_blocks = _batch_tiling(batch)

    kernel = functools.partial(_noiser_kernel, input_dim=input_dim)
    return pl.pallas_call(
        kernel,
        out_shape=jax.ShapeDtypeStruct((batch, out_w), jnp.float32),
        grid_spec=pltpu.PrefetchScalarGridSpec(
            num_scalar_prefetch=0,
            grid=(n_blocks,),
            in_specs=[
                pl.BlockSpec((tb, zin), lambda i: (i, 0)),   # z tile
                pl.BlockSpec((k1, n1), lambda i: (0, 0)),    # W1_aug, resident
                pl.BlockSpec((n1, out3), lambda i: (0, 0)),  # W2_aug, resident
            ],
            out_specs=pl.BlockSpec((tb, out_w), lambda i: (i, 0)),
        ),
        compiler_params=pltpu.CompilerParams(
            dimension_semantics=("parallel",)),      # megacore sharding on v7x
    )(z_aug, w1_aug, w2_aug)


# --------------------------------------------------------------------------
# Jitted forward (single dispatch: z draw + kernel + output slicing)
# --------------------------------------------------------------------------
@functools.partial(jax.jit, static_argnames=("input_dim", "return_z"))
def _forward_jit(x, key, w1_aug, w2_aug, *, input_dim, return_z):
    batch = x.shape[0]
    I = input_dim
    z = jax.random.uniform(key, (batch, I), jnp.float32, 0.0, 0.5)
    z_aug = jnp.concatenate([z, jnp.ones((batch, 1), jnp.float32)], axis=1)
    raw = _noiser_pallas(z_aug, w1_aug, w2_aug, input_dim=I)
    where_n = raw[:, :I]
    size_n = raw[:, I:2 * I]
    delay_n = raw[:, 2 * I:3 * I]
    if return_z:
        return where_n, size_n, delay_n, z
    return where_n, size_n, delay_n


class InsertNoiser:
    """Pallas implementation of InsertNoiser.forward (params packed once)."""

    def __init__(self, params):
        self.input_dim = params["where_w1"].shape[0]
        self.hidden_dim = params["where_w1"].shape[1]
        self.w1_aug, self.w2_aug = pack_params(params)   # packed once, cached

    def __call__(self, x, key, *, return_z=False):
        # x (NCHW) is only consulted for its batch size, as in the PyTorch module.
        return _forward_jit(x, key, self.w1_aug, self.w2_aug,
                            input_dim=self.input_dim, return_z=return_z)


# --------------------------------------------------------------------------
# Parameter init (weight_init: N(0, 0.01) weights, zero biases; stored (in, out))
# --------------------------------------------------------------------------
def init_params(key, input_dim, hidden_dim):
    keys = jax.random.split(key, 6)

    def w(k, shape):
        return jax.random.normal(k, shape, dtype=jnp.float32) * 0.01

    return {
        "where_w1": w(keys[0], (input_dim, hidden_dim)),
        "where_b1": jnp.zeros((1, hidden_dim), jnp.float32),
        "where_w2": w(keys[1], (hidden_dim, input_dim)),
        "where_b2": jnp.zeros((1, input_dim), jnp.float32),
        "size_w1": w(keys[2], (input_dim, hidden_dim)),
        "size_b1": jnp.zeros((1, hidden_dim), jnp.float32),
        "size_w2": w(keys[3], (hidden_dim, input_dim)),
        "size_b2": jnp.zeros((1, input_dim), jnp.float32),
        "delay_w1": w(keys[4], (input_dim, hidden_dim)),
        "delay_b1": jnp.zeros((1, hidden_dim), jnp.float32),
        "delay_w2": w(keys[5], (hidden_dim, input_dim)),
        "delay_b2": jnp.zeros((1, input_dim), jnp.float32),
    }


def _reference_forward(z, params):
    """Pure-JAX reference (unfused heads) for a correctness sanity check."""
    hp = jax.lax.Precision.HIGHEST

    def mlp(w1, b1, w2, b2):
        h = jnp.maximum(jnp.dot(z, w1, precision=hp) + b1, 0.0)
        return jax.nn.sigmoid(jnp.dot(h, w2, precision=hp) + b2)

    where_n = mlp(params["where_w1"], params["where_b1"],
                  params["where_w2"], params["where_b2"])
    size_n = mlp(params["size_w1"], params["size_b1"],
                 params["size_w2"], params["size_b2"])
    size_n = size_n / jnp.max(size_n, axis=1, keepdims=True) * 1460.0
    delay_n = mlp(params["delay_w1"], params["delay_b1"],
                  params["delay_w2"], params["delay_b2"])
    delay_n = delay_n / jnp.max(delay_n, axis=1, keepdims=True) * 256.0
    return where_n, size_n, delay_n


if __name__ == "__main__":
    INPUT_DIM = 16
    HIDDEN_DIM = 32

    root = jax.random.PRNGKey(0)
    k_params, k_x, k_z = jax.random.split(root, 3)

    # x is only consulted for its batch size (as in the PyTorch module); NCHW.
    x = jax.random.normal(k_x, (2, 4, 16, 16), dtype=jnp.float32)
    params = init_params(k_params, INPUT_DIM, HIDDEN_DIM)

    noiser = InsertNoiser(params)
    where_noise, size_noise, delay_noise, z = noiser(x, k_z, return_z=True)
    jax.block_until_ready((where_noise, size_noise, delay_noise, z))

    assert where_noise.shape == (2, INPUT_DIM)
    assert size_noise.shape == (2, INPUT_DIM)
    assert delay_noise.shape == (2, INPUT_DIM)
    assert bool(jnp.all(z >= 0.0)) and bool(jnp.all(z < 0.5))

    # Cross-check against a pure-JAX reference using the exact z the wrapper drew.
    ref_where, ref_size, ref_delay = _reference_forward(z, params)
    assert jnp.allclose(where_noise, ref_where, rtol=1e-4, atol=1e-4)
    assert jnp.allclose(size_noise, ref_size, rtol=1e-4, atol=1e-3)
    assert jnp.allclose(delay_noise, ref_delay, rtol=1e-4, atol=1e-3)

    # Row-max normalization sanity: every row peaks at exactly 1460 / 256.
    assert jnp.allclose(jnp.max(size_noise, axis=1), 1460.0, rtol=1e-5)
    assert jnp.allclose(jnp.max(delay_noise, axis=1), 256.0, rtol=1e-5)

    print("KERNEL_OK")
</pallas_src>

<mosaic_0001>
module attributes {stable_mosaic.version = 11 : i64} {
  func.func @_noiser_kernel(%arg0: i32, %arg1: memref<2x17xf32, #tpu.memory_space<vmem>>, %arg2: memref<17x97xf32, #tpu.memory_space<vmem>>, %arg3: memref<97x48xf32, #tpu.memory_space<vmem>>, %arg4: memref<2x128xf32, #tpu.memory_space<vmem>>) attributes {dimension_semantics = [#tpu.dimension_semantics<parallel>], iteration_bounds = array<i64: 1>, scalar_prefetch = 0 : i64, scratch_operands = 0 : i64, tpu.core_type = #tpu.core_type<tc>, window_params = [{transform_indices = @transform_0, window_bounds = array<i64: 2, 17>}, {pipeline_mode = #tpu.pipeline_mode<synchronous>, transform_indices = @transform_1, window_bounds = array<i64: 17, 97>}, {pipeline_mode = #tpu.pipeline_mode<synchronous>, transform_indices = @transform_2, window_bounds = array<i64: 97, 48>}, {transform_indices = @transform_3, window_bounds = array<i64: 2, 128>}]} {
    %c0 = arith.constant 0 : index
    %c0_0 = arith.constant 0 : index
    %0 = vector.load %arg1[%c0, %c0_0] : memref<2x17xf32, #tpu.memory_space<vmem>>, vector<2x17xf32>
    %c0_1 = arith.constant 0 : index
    %c0_2 = arith.constant 0 : index
    %1 = vector.load %arg2[%c0_1, %c0_2] : memref<17x97xf32, #tpu.memory_space<vmem>>, vector<17x97xf32>
    %cst = arith.constant dense<0.000000e+00> : vector<2x97xf32>
    %2 = tpu.matmul %0, %1, %cst {dimension_numbers = #tpu.dot_dimension_numbers<[1], [0], [0], [1], [0, 0, 1, 1], [], []>, precision = #tpu.contract_precision<fp32>} : vector<2x17xf32>, vector<17x97xf32>, vector<2x97xf32> -> vector<2x97xf32>
    %cst_3 = arith.constant 0.000000e+00 : f32
    %3 = vector.broadcast %cst_3 : f32 to vector<2x97xf32>
    %4 = arith.maximumf %2, %3 : vector<2x97xf32>
    %c0_4 = arith.constant 0 : index
    %c0_5 = arith.constant 0 : index
    %5 = vector.load %arg3[%c0_4, %c0_5] : memref<97x48xf32, #tpu.memory_space<vmem>>, vector<97x48xf32>
    %cst_6 = arith.constant dense<0.000000e+00> : vector<2x48xf32>
    %6 = tpu.matmul %4, %5, %cst_6 {dimension_numbers = #tpu.dot_dimension_numbers<[1], [0], [0], [1], [0, 0, 1, 1], [], []>, precision = #tpu.contract_precision<fp32>} : vector<2x97xf32>, vector<97x48xf32>, vector<2x48xf32> -> vector<2x48xf32>
    %7 = arith.negf %6 : vector<2x48xf32>
    %8 = math.exp %7 : vector<2x48xf32>
    %cst_7 = arith.constant 1.000000e+00 : f32
    %9 = vector.broadcast %cst_7 : f32 to vector<2x48xf32>
    %10 = arith.addf %9, %8 : vector<2x48xf32>
    %11 = arith.divf %9, %10 : vector<2x48xf32>
    %12 = vector.extract_strided_slice %11 {offsets = [0, 16], sizes = [2, 16], strides = [1, 1]} : vector<2x48xf32> to vector<2x16xf32>
    %cst_8 = arith.constant dense<0xFF800000> : vector<2xf32>
    %13 = vector.multi_reduction <maximumf>, %12, %cst_8 [1] : vector<2x16xf32> to vector<2xf32>
    %14 = vector.shape_cast %13 : vector<2xf32> to vector<2x1xf32>
    %cst_9 = arith.constant 1.460000e+03 : f32
    %15 = vector.broadcast %cst_9 : f32 to vector<2x1xf32>
    %16 = arith.divf %15, %14 : vector<2x1xf32>
    %17 = vector.extract_strided_slice %11 {offsets = [0, 32], sizes = [2, 16], strides = [1, 1]} : vector<2x48xf32> to vector<2x16xf32>
    %cst_10 = arith.constant dense<0xFF800000> : vector<2xf32>
    %18 = vector.multi_reduction <maximumf>, %17, %cst_10 [1] : vector<2x16xf32> to vector<2xf32>
    %19 = vector.shape_cast %18 : vector<2xf32> to vector<2x1xf32>
    %cst_11 = arith.constant 2.560000e+02 : f32
    %20 = vector.broadcast %cst_11 : f32 to vector<2x1xf32>
    %21 = arith.divf %20, %19 : vector<2x1xf32>
    %22 = tpu.iota {dimensions = array<i32: 1>} : vector<2x48xi32>
    %c16_i32 = arith.constant 16 : i32
    %23 = vector.broadcast %c16_i32 : i32 to vector<2x48xi32>
    %24 = arith.cmpi slt, %22, %23 : vector<2x48xi32>
    %c32_i32 = arith.constant 32 : i32
    %25 = vector.broadcast %c32_i32 : i32 to vector<2x48xi32>
    %26 = arith.cmpi slt, %22, %25 : vector<2x48xi32>
    %27 = vector.shape_cast %16 : vector<2x1xf32> to vector<2x1xf32>
    %28 = vector.broadcast %27 : vector<2x1xf32> to vector<2x48xf32>
    %29 = vector.shape_cast %21 : vector<2x1xf32> to vector<2x1xf32>
    %30 = vector.broadcast %29 : vector<2x1xf32> to vector<2x48xf32>
    %31 = arith.select %26, %28, %30 : vector<2x48xi1>, vector<2x48xf32>
    %cst_12 = arith.constant 1.000000e+00 : f32
    %32 = vector.broadcast %cst_12 : f32 to vector<2x48xf32>
    %33 = arith.select %24, %32, %31 : vector<2x48xi1>, vector<2x48xf32>
    %34 = arith.mulf %11, %33 : vector<2x48xf32>
    %c0_13 = arith.constant 0 : index
    %c0_14 = arith.constant 0 : index
    %35 = vector.load %arg4[%c0_13, %c0_14] : memref<2x128xf32, #tpu.memory_space<vmem>>, vector<2x48xf32>
    tpu.vector_store %arg4[%c0_13, %c0_14], %34 {strides = array<i32>} : memref<2x128xf32, #tpu.memory_space<vmem>>, vector<2x48xf32>,
    %cst_15 = arith.constant 0.000000e+00 : f32
    %36 = vector.broadcast %cst_15 : f32 to vector<2x80xf32>
    %c0_16 = arith.constant 0 : index
    %c48 = arith.constant 48 : index
    %37 = vector.load %arg4[%c0_16, %c48] : memref<2x128xf32, #tpu.memory_space<vmem>>, vector<2x80xf32>
    tpu.vector_store %arg4[%c0_16, %c48], %36 {strides = array<i32>} : memref<2x128xf32, #tpu.memory_space<vmem>>, vector<2x80xf32>,
    return
  }
  func.func @transform_0(%arg0: i32) -> (i32, i32) {
    %c0_i32 = arith.constant 0 : i32
    %c0_i32_0 = arith.constant 0 : i32
    return %arg0, %c0_i32 : i32, i32
  }
  func.func @transform_1(%arg0: i32) -> (i32, i32) {
    %c0_i32 = arith.constant 0 : i32
    %c0_i32_0 = arith.constant 0 : i32
    %c0_i32_1 = arith.constant 0 : i32
    return %c0_i32, %c0_i32_0 : i32, i32
  }
  func.func @transform_2(%arg0: i32) -> (i32, i32) {
    %c0_i32 = arith.constant 0 : i32
    %c0_i32_0 = arith.constant 0 : i32
    %c0_i32_1 = arith.constant 0 : i32
    return %c0_i32, %c0_i32_0 : i32, i32
  }
  func.func @transform_3(%arg0: i32) -> (i32, i32) {
    %c0_i32 = arith.constant 0 : i32
    %c0_i32_0 = arith.constant 0 : i32
    return %arg0, %c0_i32 : i32, i32
  }
}

</mosaic_0001>

<bundles_post_ra>
// kernel: _forward_jit.1
= control target key start
LH: loop header
LB: loop body
LE: loop exit
PB: predicated region body
PF: predicated region fallthrough
CT: control target
= control target key end

     0   :  { %vm22_vm0 = vcmask 1040384   ;;  %vm18_vm1 = vcmask 138240   ;;  %v1501_v0 = vmov 0.0   ;;  %vm1502_vm2 = vmmov 0   ;;  %s1933_s1 = inlined_call_operand.vmem [shape: f32[17,97], index: 1, kind: input, shape index: {}]   ;;  %s1934_s0 = inlined_call_operand.vmem [shape: f32[2,17], index: 0, kind: input, shape index: {}]   ;;  %s1935_s2 = inlined_call_operand.vmem [shape: f32[97,48], index: 2, kind: input, shape index: {}]   ;;  %s1936_s3 = inlined_call_operand.vmem [shape: f32[2,128], index: 3, kind: output, shape index: {}]  }
   0x1   :  { %1263 = vmatprep.subr.mxu0 %v1501_v0  ;;  %v17_v1 = vld [vmem:[%s1933_s1 + $0x10] sm:$0x1]  ;;  %v16_v2 = vld [vmem:[%s1933_s1 + $0x8] sm:$0xff]  ;;  %1272 = vmatprep.subr.mxu1 %v1501_v0  ;;  %v15_v5 = vld [vmem:[%s1933_s1] sm:$0xff]  ;;  %vm512_vm3 = vcmask 793600   ;;  %vm1127_vm4 = vcmask 255104  }
   0x2   :  { %v24_v3 = vsel %vm22_vm0, %v17_v1, 0  ;;  %v1532_v4 = vand.u32 4294901760, %v16_v2  ;;  %1269 = vmatprep.mubr.msk.f32.mxu0 %vm1502_vm2, %v1501_v0  ;;  %v14_v6 = vld [vmem:[%s1934_s0] sm:$0x3]  ;;  %1278 = vmatprep.mubr.msk.f32.mxu1 %vm1502_vm2, %v1501_v0  ;;  %v1546_v8 = vand.u32 4294901760, %v15_v5  ;;  %v510_v29 = vld [vmem:[%s1935_s2 + $0x58] sm:$0xff] }
   0x3   :  { %v1544_v7 = vand.u32 4294901760, %v24_v3  ;;  %v20_v9 = vsel %vm18_vm1, %v14_v6, 0  ;;  %v511_v18 = vld [vmem:[%s1935_s2 + $0x60] sm:$0x1]  ;;  %v1572_v31 = vand.u32 4294901760, %v510_v29  ;;  %v509_v40 = vld [vmem:[%s1935_s2 + $0x50] sm:$0xff] }
   0x4   :  { %v1548_v10 = vand.u32 4294901760, %v20_v9  ;;  %v139_v11 = vsub.f32 %v16_v2, %v1532_v4  ;;  %v146_v13 = vsub.f32 %v15_v5, %v1546_v8  ;;  %v517_v24 = vsel %vm22_vm0, %v511_v18, 0  ;;  %v508_v42 = vld [vmem:[%s1935_s2 + $0x48] sm:$0xff]  ;;  %v507_v45 = vld [vmem:[%s1935_s2 + $0x40] sm:$0xff]  ;;  %v506_v49 = vld [vmem:[%s1935_s2 + $0x38] sm:$0xff] }
   0x5   :  { %1264 = vmatpush3.msra.mxu0 %v1544_v7  ;;  %v132_v12 = vsub.f32 %v24_v3, %v1544_v7  ;;  %v1567_v30 = vand.u32 4294901760, %v517_v24  ;;  %v1584_v33 = vsub.f32 %v510_v29, %v1572_v31  ;;  %v1630_v41 = vand.u32 4294901760, %v509_v40  ;;  %v505_v54 = vld [vmem:[%s1935_s2 + $0x30] sm:$0xff]  ;;  %v504_v60 = vld [vmem:[%s1935_s2 + $0x28] sm:$0xff]  ;;  %v503_v3 = vld [vmem:[%s1935_s2 + $0x20] sm:$0xff] }
   0x6   :  { %1265 = vmatprep.subr.mxu0 %v1501_v0  ;;  %v95_v14 = vsub.f32 %v20_v9, %v1548_v10  ;;  %v140_v15 = vand.u32 4294901760, %v139_v11  ;;  %v147_v17 = vand.u32 4294901760, %v146_v13  ;;  %v1638_v44 = vand.u32 4294901760, %v508_v42  ;;  %v502_v9 = vld [vmem:[%s1935_s2 + $0x18] sm:$0xff] }
   0x7   :  { %1266 = vmatpush3.msra.mxu0 %v1532_v4  ;;  %v133_v16 = vand.u32 4294901760, %v132_v12  ;;  %v1575_v32 = vsub.f32 %v517_v24, %v1567_v30  ;;  %v623_v35 = vand.u32 4294901760, %v1584_v33  ;;  %v1636_v43 = vsub.f32 %v509_v40, %v1630_v41 }
   0x8   :  { %1267 = vmatprep.subr.mxu0 %v1501_v0  ;;  %v96_v19 = vand.u32 4294901760, %v95_v14  ;;  %v141_v20 = vsub.f32 %v139_v11, %v140_v15  ;;  %v148_v22 = vsub.f32 %v146_v13, %v147_v17  ;;  %v1647_v47 = vsub.f32 %v508_v42, %v1638_v44 }
   0x9   :  { %1268 = vmatpush3.msra.mxu0 %v1546_v8  ;;  %v134_v21 = vsub.f32 %v132_v12, %v133_v16  ;;  %v616_v34 = vand.u32 4294901760, %v1575_v32  ;;  %v624_v37 = vsub.f32 %v1584_v33, %v623_v35  ;;  %v630_v46 = vand.u32 4294901760, %v1636_v43 }
   0xa   :  { %1281 = vmatprep.subr.mxu0 %v1501_v0  ;;  %v97_v23 = vsub.f32 %v95_v14, %v96_v19  ;;  %v142_v26 = vand.u32 4294901760, %v141_v20  ;;  %v149_v28 = vand.u32 4294901760, %v148_v22  ;;  %v1649_v48 = vand.u32 4294901760, %v507_v45 }
   0xb   :  { %v135_v25 = vand.u32 4294901760, %v134_v21  ;;  %v617_v36 = vsub.f32 %v1575_v32, %v616_v34  ;;  %v625_v39 = vand.u32 4294901760, %v624_v37  ;;  %v631_v50 = vsub.f32 %v1636_v43, %v630_v46  ;;  %v500_v21 = vld [vmem:[%s1935_s2 + $0x8] sm:$0xff] }
   0xc   :  { %v98_v27 = vand.u32 4294901760, %v97_v23  ;;  %v637_v51 = vand.u32 4294901760, %v1647_v47  ;;  %v1661_v52 = vsub.f32 %v507_v45, %v1649_v48  ;;  %v1663_v53 = vand.u32 4294901760, %v506_v49 }
   0xd   :  { %1273 = vmatpush3.msra.mxu1 %v135_v25  ;;  %v618_v38 = vand.u32 4294901760, %v617_v36  ;;  %v632_v55 = vand.u32 4294901760, %v631_v50  ;;  %v1678_v59 = vand.u32 4294901760, %v505_v54  ;;  %v1688_v1 = vand.u32 4294901760, %v504_v60 }
   0xe   :  { %1274 = vmatprep.subr.mxu1 %v1501_v0  ;;  %1270 = vmatmul.mubr.f32.vlgmr.msra.gmra.mxu0 %v98_v27  ;;  %v638_v56 = vsub.f32 %v1647_v47, %v637_v51  ;;  %v644_v57 = vand.u32 4294901760, %v1661_v52  ;;  %v1675_v58 = vsub.f32 %v506_v49, %v1663_v53  ;;  %v499_v27 = vld [vmem:[%s1935_s2] sm:$0xff]  ;;  %vm1133_vm5 = vcmask 386304  }
   0xf   :  { %1275 = vmatpush3.msra.mxu1 %v142_v26  ;;  %1282 = vmatpush3.msra.mxu0 %v132_v12  ;;  %v1692_v2 = vsub.f32 %v505_v54, %v1678_v59  ;;  %v1702_v6 = vsub.f32 %v504_v60, %v1688_v1  ;;  %v1751_v26 = vand.u32 4294901760, %v500_v21  ;;  %v1762_v37 = vand.u32 4294901760, %v499_v27 }
  0x10   :  { %1276 = vmatprep.subr.mxu1 %v1501_v0  ;;  %1283 = vmatprep.subr.mxu0 %v1501_v0  ;;  %v639_v61 = vand.u32 4294901760, %v638_v56  ;;  %v645_v62 = vsub.f32 %v1661_v52, %v644_v57  ;;  %v651_v63 = vand.u32 4294901760, %v1675_v58  ;;  %vm1146_vm8 = vcmask 386048  }
  0x11   :  { %1277 = vmatpush3.msra.mxu1 %v149_v28  ;;  %1284 = vmatpush3.msra.mxu0 %v139_v11  ;;  %v665_v11 = vand.u32 4294901760, %v1702_v6  ;;  %v1774_v42 = vsub.f32 %v499_v27, %v1762_v37  ;;  %vm1148_vm9 = vcmask 1041792  }
  0x12   :  { %1279 = vmatmul.mubr.f32.vlgmr.msra.gmra.mxu1 %v1548_v10  ;;  %1285 = vmatprep.subr.mxu0 %v1501_v0  ;;  %v652_v5 = vsub.f32 %v1675_v58, %v651_v63 }
  0x13   :  { %1290 = vmatprep.subr.mxu1 %v1501_v0  ;;  %1286 = vmatpush3.msra.mxu0 %v146_v13  ;;  %v1717_v13 = vand.u32 4294901760, %v502_v9  ;;  %v700_v50 = vand.u32 4294901760, %v1774_v42 }
  0x14   :  { %1287 = vmatprep.mubr.msk.f32.mxu0 %vm1502_vm2, %v1501_v0  ;;  %1291 = vmatpush3.msra.mxu1 %v1544_v7 }
  0x15   :  { %1288 = vmatmul.mubr.f32.vlgmr.msra.gmra.mxu0 %v95_v14  ;;  %1292 = vmatprep.subr.mxu1 %v1501_v0  ;;  %v1733_v18 = vsub.f32 %v502_v9, %v1717_v13 }
  0x16   :  { %1299 = vmatprep.subr.mxu0 %v1501_v0  ;;  %1293 = vmatpush3.msra.mxu1 %v1532_v4 }
  0x17   :  { %1300 = vmatpush3.msra.mxu0 %v133_v16  ;;  %1294 = vmatprep.subr.mxu1 %v1501_v0  ;;  %v666_v16 = vsub.f32 %v1702_v6, %v665_v11  ;;  %v679_v24 = vand.u32 4294901760, %v1733_v18 }
  0x18   :  { %1301 = vmatprep.subr.mxu0 %v1501_v0  ;;  %1295 = vmatpush3.msra.mxu1 %v1546_v8 }
  0x19   :  { %1296 = vmatprep.mubr.msk.f32.mxu1 %vm1502_vm2, %v1501_v0  ;;  %1302 = vmatpush3.msra.mxu0 %v140_v15  ;;  %v501_v15 = vld [vmem:[%s1935_s2 + $0x10] sm:$0xff]  ;;  %v667_v22 = vand.u32 4294901760, %v666_v16  ;;  %v680_v29 = vsub.f32 %v1733_v18, %v679_v24 }
  0x1a   :  { %1297 = vmatmul.mubr.f32.vlgmr.msra.gmra.mxu1 %v96_v19  ;;  %1303 = vmatprep.subr.mxu0 %v1501_v0  ;;  %v1735_v19 = vand.u32 4294901760, %v501_v15 }
  0x1b   :  { %1308 = vmatprep.subr.mxu1 %v1501_v0  ;;  %1304 = vmatpush3.msra.mxu0 %v147_v17 }
  0x1c   :  { %1305 = vmatprep.mubr.msk.f32.mxu0 %vm1502_vm2, %v1501_v0  ;;  %1309 = vmatpush3.msra.mxu1 %v1544_v7  ;;  %v1704_v7 = vand.u32 4294901760, %v503_v3  ;;  %v1748_v25 = vsub.f32 %v501_v15, %v1735_v19 }
  0x1d   :  { %1306 = vmatmul.mubr.f32.vlgmr.msra.gmra.mxu0 %v1548_v10  ;;  %1310 = vmatprep.subr.mxu1 %v1501_v0 }
  0x1e   :  { %1311 = vmatpush3.msra.mxu1 %v1532_v4  ;;  %1314 = vmatprep.mubr.msk.f32.mxu1 %vm1502_vm2, %v1501_v0  ;;  %v646_v4 = vand.u32 4294901760, %v645_v62  ;;  %v1715_v12 = vsub.f32 %v503_v3, %v1704_v7  ;;  %v686_v36 = vand.u32 4294901760, %v1748_v25 }
  0x1f   :  { %1312 = vmatprep.subr.mxu1 %v1501_v0  ;;  %1317 = vmatprep.subr.mxu0 %v1501_v0 }
  0x20   :  { %1313 = vmatpush3.msra.mxu1 %v1546_v8  ;;  %1318 = vmatpush3.msra.mxu0 %v1567_v30  ;;  %v658_v8 = vand.u32 4294901760, %v1692_v2  ;;  %v672_v17 = vand.u32 4294901760, %v1715_v12  ;;  %v687_v40 = vsub.f32 %v1748_v25, %v686_v36 }
  0x21   :  { %1315 = vmatmul.mubr.f32.vlgmr.msra.gmra.mxu1 %v1548_v10  ;;  %1346 = vmatprep.subr.mxu1 %v1501_v0  ;;  %v653_v10 = vand.u32 4294901760, %v652_v5 }
  0x22   :  { %1347 = vmatpush3.msra.mxu1 %v618_v38  ;;  %1319 = vmatprep.subr.mxu0 %v1501_v0  ;;  %v659_v14 = vsub.f32 %v1692_v2, %v658_v8  ;;  %v673_v23 = vsub.f32 %v1715_v12, %v672_v17  ;;  %v1766_v38 = vsub.f32 %v500_v21, %v1751_v26  ;;  %v688_v49 = vand.u32 4294901760, %v687_v40 }
  0x23   :  { %1348 = vmatprep.subr.mxu1 %v1501_v0  ;;  %1320 = vmatpush3.msra.mxu0 %v1572_v31 }
  0x24   :  { %1349 = vmatpush3.msra.mxu1 %v625_v39  ;;  %1321 = vmatprep.subr.mxu0 %v1501_v0  ;;  %v660_v20 = vand.u32 4294901760, %v659_v14  ;;  %v674_v28 = vand.u32 4294901760, %v673_v23  ;;  %v681_v39 = vand.u32 4294901760, %v680_v29  ;;  %v693_v45 = vand.u32 4294901760, %v1766_v38 }
  0x25   :  { %1350 = vmatprep.subr.mxu1 %v1501_v0  ;;  %1372 = vmatprep.mubr.msk.f32.mxu1 %vm1502_vm2, %v1501_v0 }
  0x26   :  { %1343 = vmatprep.mubr.msk.f32.mxu0 %vm1502_vm2, %v1501_v0  ;;  %1322 = vmatpush3.msra.mxu0 %v1630_v41  ;;  %v694_v54 = vsub.f32 %v1766_v38, %v693_v45 }
  0x27   :  { %1323 = vmatprep.subr.mxu0 %v1501_v0  ;;  %1351 = vmatpush3.msra.mxu1 %v632_v55  ;;  %v701_v55 = vsub.f32 %v1774_v42, %v700_v50 }
  0x28   :  { %1324 = vmatpush3.msra.mxu0 %v1638_v44  ;;  %1352 = vmatprep.subr.mxu1 %v1501_v0  ;;  %v695_v56 = vand.u32 4294901760, %v694_v54 }
  0x29   :  { %1325 = vmatprep.subr.mxu0 %v1501_v0  ;;  %1353 = vmatpush3.msra.mxu1 %v639_v61  ;;  %v702_v60 = vand.u32 4294901760, %v701_v55 }
  0x2a   :  { %1326 = vmatpush3.msra.mxu0 %v1649_v48  ;;  %1354 = vmatprep.subr.mxu1 %v1501_v0 }
  0x2b   :  { %1327 = vmatprep.subr.mxu0 %v1501_v0  ;;  %1355 = vmatpush3.msra.mxu1 %v646_v4 }
  0x2c   :  { %1328 = vmatpush3.msra.mxu0 %v1663_v53  ;;  %1356 = vmatprep.subr.mxu1 %v1501_v0 }
  0x2d   :  { %1329 = vmatprep.subr.mxu0 %v1501_v0  ;;  %1357 = vmatpush3.msra.mxu1 %v653_v10 }
  0x2e   :  { %1330 = vmatpush3.msra.mxu0 %v1678_v59  ;;  %1358 = vmatprep.subr.mxu1 %v1501_v0 }
  0x2f   :  { %1331 = vmatprep.subr.mxu0 %v1501_v0  ;;  %1359 = vmatpush3.msra.mxu1 %v660_v20 }
  0x30   :  { %1332 = vmatpush3.msra.mxu0 %v1688_v1  ;;  %1360 = vmatprep.subr.mxu1 %v1501_v0 }
  0x31   :  { %1333 = vmatprep.subr.mxu0 %v1501_v0  ;;  %1361 = vmatpush3.msra.mxu1 %v667_v22 }
  0x32   :  { %1334 = vmatpush3.msra.mxu0 %v1704_v7  ;;  %1362 = vmatprep.subr.mxu1 %v1501_v0 }
  0x33   :  { %1335 = vmatprep.subr.mxu0 %v1501_v0  ;;  %1363 = vmatpush3.msra.mxu1 %v674_v28 }
  0x34   :  { %1336 = vmatpush3.msra.mxu0 %v1717_v13  ;;  %1364 = vmatprep.subr.mxu1 %v1501_v0 }
  0x35   :  { %1337 = vmatprep.subr.mxu0 %v1501_v0  ;;  %1365 = vmatpush3.msra.mxu1 %v681_v39 }
  0x36   :  { %1338 = vmatpush3.msra.mxu0 %v1735_v19  ;;  %1366 = vmatprep.subr.mxu1 %v1501_v0 }
  0x37   :  { %1339 = vmatprep.subr.mxu0 %v1501_v0  ;;  %1367 = vmatpush3.msra.mxu1 %v688_v49 }
  0x38   :  { %1340 = vmatpush3.msra.mxu0 %v1751_v26  ;;  %1368 = vmatprep.subr.mxu1 %v1501_v0 }
  0x39   :  { %1341 = vmatprep.subr.mxu0 %v1501_v0  ;;  %1369 = vmatpush3.msra.mxu1 %v695_v56 }
  0x3a   :  { %1342 = vmatpush3.msra.mxu0 %v1762_v37  ;;  %1370 = vmatprep.subr.mxu1 %v1501_v0 }
  0x3b   :  { %1375 = vmatprep.subr.mxu0 %v1501_v0  ;;  %1371 = vmatpush3.msra.mxu1 %v702_v60 }
  0x3c   :  { %1404 = vmatprep.subr.mxu1 %v1501_v0 }
  0xce   :  { %v100_v61 = vpop.f32.mrf.mxu0 }
  0xd0   :  { %v1271_v62 = vpop.f32.mrf.mxu0 }
  0xd2   :  { %v186_v3 = vpop.f32.mrf.mxu1 }
  0xd3   :  { %v187_v9 = vadd.f32 %v186_v3, %v100_v61 }
  0xd4   :  { %v1280_v4 = vpop.f32.mrf.mxu1 }
  0xd5   :  { %v264_v5 = vpop.f32.mrf.mxu0 }
  0xd6   :  { %v265_v14 = vadd.f32 %v264_v5, %v187_v9 }
  0xd7   :  { %v1289_v10 = vpop.f32.mrf.mxu0 }
  0xda   :  { %v340_v15 = vpop.f32.mrf.mxu1 }
  0xdb   :  { %v341_v16 = vadd.f32 %v340_v15, %v265_v14 }
  0xdc   :  { %v1298_v20 = vpop.f32.mrf.mxu1 }
  0xdd   :  { %v420_v21 = vpop.f32.mrf.mxu0 }
  0xde   :  { %v421_v23 = vadd.f32 %v420_v21, %v341_v16 }
  0xdf   :  { %v1307_v22 = vpop.f32.mrf.mxu0 }
  0xe1   :  { %v494_v27 = vpop.f32.mrf.mxu1 }
  0xe2   :  { %v495_v28 = vadd.f32 %v494_v27, %v421_v23 }
  0xe3   :  { %v1316_v29 = vpop.f32.mrf.mxu1 }
  0xe4   :  { %v498_v39 = vmax.f32 %v495_v28, 0.0 }
  0xe6   :  { %v514_v40 = vsel %vm512_vm3, %v498_v39, 0 }
  0xe7   :  { %v1792_v49 = vand.u32 4294901760, %v514_v40 }
  0xe9   :  { %v1795_v54 = vsub.f32 %v514_v40, %v1792_v49  ;;  %1373 = vmatmul.mubr.f32.vlgmr.msra.gmra.mxu1 %v1792_v49 }
  0xea   :  { %1405 = vmatpush3.msra.mxu1 %v1567_v30  ;;  %1430 = vmatprep.mubr.msk.f32.mxu1 %vm1502_vm2, %v1501_v0 }
  0xeb   :  { %v599_v55 = vand.u32 4294901760, %v1795_v54  ;;  %1406 = vmatprep.subr.mxu1 %v1501_v0 }
  0xec   :  { %1407 = vmatpush3.msra.mxu1 %v1572_v31 }
  0xed   :  { %1408 = vmatprep.subr.mxu1 %v1501_v0  ;;  %v600_v56 = vsub.f32 %v1795_v54, %v599_v55 }
  0xee   :  { %1409 = vmatpush3.msra.mxu1 %v1630_v41 }
  0xef   :  { %1410 = vmatprep.subr.mxu1 %v1501_v0  ;;  %v601_v60 = vand.u32 4294901760, %v600_v56 }
  0xf0   :  { %1411 = vmatpush3.msra.mxu1 %v1638_v44 }
  0xf1   :  { %1412 = vmatprep.subr.mxu1 %v1501_v0  ;;  %1344 = vmatmul.mubr.f32.vlgmr.msra.gmra.mxu0 %v601_v60 }
  0xf2   :  { %1376 = vmatpush3.msra.mxu0 %v1575_v32  ;;  %1413 = vmatpush3.msra.mxu1 %v1649_v48 }
  0xf3   :  { %1377 = vmatprep.subr.mxu0 %v1501_v0  ;;  %1414 = vmatprep.subr.mxu1 %v1501_v0 }
  0xf4   :  { %1378 = vmatpush3.msra.mxu0 %v1584_v33  ;;  %1415 = vmatpush3.msra.mxu1 %v1663_v53 }
  0xf5   :  { %1379 = vmatprep.subr.mxu0 %v1501_v0  ;;  %1416 = vmatprep.subr.mxu1 %v1501_v0 }
  0xf6   :  { %1380 = vmatpush3.msra.mxu0 %v1636_v43  ;;  %1417 = vmatpush3.msra.mxu1 %v1678_v59 }
  0xf7   :  { %1381 = vmatprep.subr.mxu0 %v1501_v0  ;;  %1418 = vmatprep.subr.mxu1 %v1501_v0 }
  0xf8   :  { %1382 = vmatpush3.msra.mxu0 %v1647_v47  ;;  %1419 = vmatpush3.msra.mxu1 %v1688_v1 }
  0xf9   :  { %1383 = vmatprep.subr.mxu0 %v1501_v0  ;;  %1420 = vmatprep.subr.mxu1 %v1501_v0 }
  0xfa   :  { %1384 = vmatpush3.msra.mxu0 %v1661_v52  ;;  %1421 = vmatpush3.msra.mxu1 %v1704_v7 }
  0xfb   :  { %1385 = vmatprep.subr.mxu0 %v1501_v0  ;;  %1422 = vmatprep.subr.mxu1 %v1501_v0 }
  0xfc   :  { %1386 = vmatpush3.msra.mxu0 %v1675_v58  ;;  %1423 = vmatpush3.msra.mxu1 %v1717_v13 }
  0xfd   :  { %1387 = vmatprep.subr.mxu0 %v1501_v0  ;;  %1424 = vmatprep.subr.mxu1 %v1501_v0 }
  0xfe   :  { %1388 = vmatpush3.msra.mxu0 %v1692_v2  ;;  %1425 = vmatpush3.msra.mxu1 %v1735_v19 }
  0xff   :  { %1389 = vmatprep.subr.mxu0 %v1501_v0  ;;  %1426 = vmatprep.subr.mxu1 %v1501_v0 }
 0x100   :  { %1390 = vmatpush3.msra.mxu0 %v1702_v6  ;;  %1427 = vmatpush3.msra.mxu1 %v1751_v26 }
 0x101   :  { %1391 = vmatprep.subr.mxu0 %v1501_v0  ;;  %1428 = vmatprep.subr.mxu1 %v1501_v0 }
 0x102   :  { %1392 = vmatpush3.msra.mxu0 %v1715_v12  ;;  %1429 = vmatpush3.msra.mxu1 %v1762_v37  ;;  %v1139_v12 = vlaneseq }
 0x103   :  { %1393 = vmatprep.subr.mxu0 %v1501_v0  ;;  %1431 = vmatmul.mubr.f32.vlgmr.msra.gmra.mxu1 %v599_v55 }
 0x104   :  { %1462 = vmatprep.subr.mxu1 %v1501_v0  ;;  %1394 = vmatpush3.msra.mxu0 %v1733_v18 }
 0x105   :  { %1463 = vmatpush3.msra.mxu1 %v1567_v30  ;;  %1395 = vmatprep.subr.mxu0 %v1501_v0 }
 0x106   :  { %1464 = vmatprep.subr.mxu1 %v1501_v0  ;;  %1396 = vmatpush3.msra.mxu0 %v1748_v25 }
 0x107   :  { %1465 = vmatpush3.msra.mxu1 %v1572_v31  ;;  %1397 = vmatprep.subr.mxu0 %v1501_v0 }
 0x108   :  { %1466 = vmatprep.subr.mxu1 %v1501_v0  ;;  %1398 = vmatpush3.msra.mxu0 %v1766_v38 }
 0x109   :  { %1467 = vmatpush3.msra.mxu1 %v1630_v41  ;;  %1399 = vmatprep.subr.mxu0 %v1501_v0 }
 0x10a   :  { %1468 = vmatprep.subr.mxu1 %v1501_v0  ;;  %1400 = vmatpush3.msra.mxu0 %v1774_v42 }
 0x10b   :  { %1401 = vmatprep.mubr.msk.f32.mxu0 %vm1502_vm2, %v1501_v0  ;;  %1469 = vmatpush3.msra.mxu1 %v1638_v44 }
 0x10c   :  { %1402 = vmatmul.mubr.f32.vlgmr.msra.gmra.mxu0 %v1795_v54  ;;  %1433 = vmatprep.subr.mxu0 %v1501_v0 }
 0x10d   :  { %1470 = vmatprep.subr.mxu1 %v1501_v0  ;;  %1434 = vmatpush3.msra.mxu0 %v616_v34 }
 0x10e   :  { %1471 = vmatpush3.msra.mxu1 %v1649_v48  ;;  %1435 = vmatprep.subr.mxu0 %v1501_v0 }
 0x10f   :  { %1472 = vmatprep.subr.mxu1 %v1501_v0  ;;  %1436 = vmatpush3.msra.mxu0 %v623_v35 }
 0x110   :  { %1473 = vmatpush3.msra.mxu1 %v1663_v53  ;;  %1437 = vmatprep.subr.mxu0 %v1501_v0 }
 0x111   :  { %1474 = vmatprep.subr.mxu1 %v1501_v0  ;;  %1438 = vmatpush3.msra.mxu0 %v630_v46 }
 0x112   :  { %1475 = vmatpush3.msra.mxu1 %v1678_v59  ;;  %1439 = vmatprep.subr.mxu0 %v1501_v0 }
 0x113   :  { %1476 = vmatprep.subr.mxu1 %v1501_v0  ;;  %1440 = vmatpush3.msra.mxu0 %v637_v51 }
 0x114   :  { %1477 = vmatpush3.msra.mxu1 %v1688_v1  ;;  %1441 = vmatprep.subr.mxu0 %v1501_v0 }
 0x115   :  { %1478 = vmatprep.subr.mxu1 %v1501_v0  ;;  %1442 = vmatpush3.msra.mxu0 %v644_v57 }
 0x116   :  { %1479 = vmatpush3.msra.mxu1 %v1704_v7  ;;  %1443 = vmatprep.subr.mxu0 %v1501_v0 }
 0x117   :  { %1480 = vmatprep.subr.mxu1 %v1501_v0  ;;  %1444 = vmatpush3.msra.mxu0 %v651_v63 }
 0x118   :  { %1481 = vmatpush3.msra.mxu1 %v1717_v13  ;;  %1445 = vmatprep.subr.mxu0 %v1501_v0  ;;  %v1140_v13 = vand.u32 127, %v1139_v12 }
 0x119   :  { %1482 = vmatprep.subr.mxu1 %v1501_v0  ;;  %1446 = vmatpush3.msra.mxu0 %v658_v8 }
 0x11a   :  { %1483 = vmatpush3.msra.mxu1 %v1735_v19  ;;  %1447 = vmatprep.subr.mxu0 %v1501_v0  ;;  %vm1142_vm6 = vcmp.lt.s32.totalorder %v1140_v13, 32  ;;  %vm1141_vm7 = vcmp.lt.s32.totalorder %v1140_v13, 16 }
 0x11b   :  { %1484 = vmatprep.subr.mxu1 %v1501_v0  ;;  %1448 = vmatpush3.msra.mxu0 %v665_v11 }
 0x11c   :  { %1485 = vmatpush3.msra.mxu1 %v1751_v26  ;;  %1449 = vmatprep.subr.mxu0 %v1501_v0 }
 0x11d   :  { %1486 = vmatprep.subr.mxu1 %v1501_v0  ;;  %1450 = vmatpush3.msra.mxu0 %v672_v17 }
 0x11e   :  { %1487 = vmatpush3.msra.mxu1 %v1762_v37  ;;  %1488 = vmatprep.mubr.msk.f32.mxu1 %vm1502_vm2, %v1501_v0 }
 0x11f   :  { %1451 = vmatprep.subr.mxu0 %v1501_v0  ;;  %1489 = vmatmul.mubr.f32.vlgmr.msra.gmra.mxu1 %v1792_v49 }
 0x120   :  { %1452 = vmatpush3.msra.mxu0 %v679_v24  ;;  %1459 = vmatprep.mubr.msk.f32.mxu0 %vm1502_vm2, %v1501_v0 }
 0x121   :  { %1453 = vmatprep.subr.mxu0 %v1501_v0 }
 0x122   :  { %1454 = vmatpush3.msra.mxu0 %v686_v36 }
 0x123   :  { %1455 = vmatprep.subr.mxu0 %v1501_v0 }
 0x124   :  { %1456 = vmatpush3.msra.mxu0 %v693_v45 }
 0x125   :  { %1457 = vmatprep.subr.mxu0 %v1501_v0 }
 0x126   :  { %1458 = vmatpush3.msra.mxu0 %v700_v50 }
 0x127   :  { %1460 = vmatmul.mubr.f32.vlgmr.msra.gmra.mxu0 %v1792_v49 }
 0x1a9   :  { %v739_v30 = vpop.f32.mrf.mxu1 }
 0x1ab   :  { %v1374_v31 = vpop.f32.mrf.mxu1 }
 0x1b1   :  { %v603_v32 = vpop.f32.mrf.mxu0 }
 0x1b2   :  { %v740_v46 = vadd.f32 %v739_v30, %v603_v32 }
 0x1b3   :  { %v1345_v33 = vpop.f32.mrf.mxu0 }
 0x1c3   :  { %v923_v34 = vpop.f32.mrf.mxu1 }
 0x1c5   :  { %v1432_v35 = vpop.f32.mrf.mxu1 }
 0x1cc   :  { %v837_v41 = vpop.f32.mrf.mxu0 }
 0x1cd   :  { %v838_v48 = vadd.f32 %v837_v41, %v740_v46 }
 0x1ce   :  { %v1403_v43 = vpop.f32.mrf.mxu0 }
 0x1cf   :  { %v924_v51 = vadd.f32 %v923_v34, %v838_v48 }
 0x1df   :  { %v1117_v44 = vpop.f32.mrf.mxu1 }
 0x1e1   :  { %v1490_v47 = vpop.f32.mrf.mxu1 }
 0x1e7   :  { %v1033_v52 = vpop.f32.mrf.mxu0 }
 0x1e8   :  { %v1034_v53 = vadd.f32 %v1033_v52, %v924_v51 }
 0x1e9   :  { %v1461_v57 = vpop.f32.mrf.mxu0 }
 0x1ea   :  { %v1118_v58 = vadd.f32 %v1117_v44, %v1034_v53 }
 0x1ec   :  { %v1154_v59 = vmul.f32 -1.442695, %v1118_v58 }
 0x1ee   :  { %1493 = vpow2.f32 %v1154_v59 }
 0x1fb   :  { %v1494_v63 = vpop.eup %1493 }
 0x1fc   :  { %v1124_v1 = vadd.f32 1.0, %v1494_v63 }
 0x1fe   :  { %1495 = vrcp.f32 %v1124_v1 }
 0x20b   :  { %v1496_v2 = vpop.eup %1495 }
 0x20c   :  { %v1128_v6 = vsel %vm1127_vm4, %v1496_v2, -inf  ;;  %v1134_v7 = vsel %vm1133_vm5, %v1496_v2, -inf }
 0x20d   :  { %1129 = vmax.xlane.f32.xlu0 %v1128_v6 }
 0x211   :  { %1135 = vmax.xlane.f32.xlu0 %v1134_v7 }
 0x296   :  { %v1130_v8 = vpop.xlane.xlu0 %1129 }
 0x297   :  { %1497 = vrcp.f32 %v1130_v8 }
 0x29a   :  { %v1136_v11 = vpop.xlane.xlu0 %1135 }
 0x29b   :  { %1499 = vrcp.f32 %v1136_v11 }
 0x2a4   :  { %v1498_v17 = vpop.eup %1497 }
 0x2a5   :  { %v1132_v19 = vmul.f32 1460.0, %v1498_v17 }
 0x2a8   :  { %v1500_v18 = vpop.eup %1499 }
 0x2a9   :  { %v1138_v24 = vmul.f32 256.0, %v1500_v18 }
 0x2ab   :  { %v1143_v25 = vsel %vm1142_vm6, %v1132_v19, %v1138_v24 }
 0x2ac   :  { %v1144_v26 = vsel %vm1141_vm7, 1.0, %v1143_v25 }
 0x2ad   :  { %v1145_v36 = vmul.f32 %v1496_v2, %v1144_v26 }
 0x2af   :  { %1147 = vst.msk [vmem:[%s1936_s3] sm:$0x3] %vm1146_vm8, %v1145_v36 }
 0x2b0   :  { %1149 = vst.msk [vmem:[%s1936_s3] sm:$0x3] %vm1148_vm9, %v1501_v0 }

</bundles_post_ra>
